<compile_context>
chip_gen: v6e
topology: v6e:2x2x1
jax: 0.10.0
libtpu: 0.0.40
codegen_flags: <defaults>
</compile_context>

<pallas_src>
import functools
import numpy as np
import jax
import jax.numpy as jnp
from jax.experimental import pallas as pl
from jax.experimental.pallas import tpu as pltpu

ALPHA = 0.85
MAX_ITER = 100
TOL = 1e-6


# ----------------------------- VMEM sizing helpers -------------------------- #

def _vmem_budget():
    """Budget derived from physical VMEM (per generation); conservative fallback."""
    try:
        info = pltpu.get_tpu_info()
        cap = getattr(info, "vmem_capacity_bytes", None)
        if cap:
            return int(cap * 0.75)
    except Exception:
        pass
    return 32 << 20  # v6e/v7x scoped default


def _vmem_limit(resident_bytes, budget):
    return int(min(budget, max(resident_bytes + (4 << 20), 16 << 20)))


def _choose_encode_td(d_pad, n, batch, budget):
    """Largest lane tile (multiple of 128, <=512) dividing d_pad that fits VMEM."""
    cands = [c for c in (512, 384, 256, 128) if c <= d_pad and d_pad % c == 0]
    if not cands:
        cands = [d_pad]
    if batch == 1 and d_pad >= 256:
        # v7x dual-TC: keep >= 2 lane tiles so "parallel" has work to split
        # when there is no batch axis.
        halved = [c for c in cands if d_pad // c >= 2]
        if halved:
            cands = halved
    for td in cands:
        # G (bf16, 2 bufs) + H tile (bf16, 2 bufs) + out tile (f32, 2 bufs)
        need = 2 * n * n * 2 + 2 * n * td * 2 + 2 * td * 4
        if need <= budget:
            return td, need
    td = cands[-1]
    return td, 2 * n * n * 2 + 2 * n * td * 2 + 2 * td * 4


# ----------------------------- Pallas kernels ------------------------------ #

def _pagerank_kernel(mt_ref, v_ref, *, alpha, max_iter, tol, check_every):
    """Power iteration, lane-dense (1, N) state.

    mt_ref holds (alpha * M)^T for one graph so  v_new = v_row @ M^T == (M @ v_col)^T.
    Convergence is checked once per `check_every`-step chunk; the returned v is
    the first iterate in the chunk that satisfied err < N*tol (torch semantics).
    """
    n = mt_ref.shape[-1]
    mt = mt_ref[0]                                              # (N, N) f32
    p_term = jnp.full((1, n), (1.0 / n) * (1.0 - alpha), dtype=jnp.float32)
    v0 = jnp.full((1, n), 1.0 / n, dtype=jnp.float32)
    thresh = jnp.float32(n * tol)

    def step(v):
        v_new = jnp.dot(v, mt, preferred_element_type=jnp.float32) + p_term  # (1, N)
        err = jnp.sum(jnp.abs(v_new - v))
        return v_new, err

    def cond(carry):
        _, i, conv = carry
        return jnp.logical_and(i < max_iter, conv == 0)

    def body(carry):
        v, i, _ = carry
        vs, errs = [], []
        cur = v
        for _ in range(check_every):                             # unrolled chunk
            cur, err = step(cur)
            vs.append(cur)
            errs.append(err)
        out = vs[-1]
        conv = jnp.int32(0)
        for k in range(check_every - 1, -1, -1):                 # pick FIRST satisfying
            hit = errs[k] < thresh
            out = jnp.where(hit, vs[k], out)
            conv = jnp.where(hit, jnp.int32(1), conv)
        return out, i + check_every, conv

    v_final, _, _ = jax.lax.while_loop(
        cond, body, (v0, jnp.int32(0), jnp.int32(0)))
    v_ref[0] = v_final


def _encode_kernel(g_ref, h_ref, o_ref):
    """out[d] = sum_ij G[i,j] * H[i,d] * H[j,d]  ==  multiset(bind(H[row], H[col]))."""
    h = h_ref[0]                                                 # (N, td) bf16
    gh = jnp.dot(g_ref[0], h, preferred_element_type=jnp.float32)  # (N, td) f32
    o_ref[0] = jnp.sum(h.astype(jnp.float32) * gh, axis=0, keepdims=True)  # (1, td)


# ------------------------------ JAX wrappers -------------------------------- #

def pagerank_pallas(mt_batch, *, alpha=ALPHA, max_iter=MAX_ITER, tol=TOL):
    """mt_batch: (B, N, N) f32 = (alpha * stochastic_matrix)^T per graph. Returns (B, N)."""
    b, n, _ = mt_batch.shape
    check_every = 4 if max_iter % 4 == 0 else (2 if max_iter % 2 == 0 else 1)
    kernel = functools.partial(
        _pagerank_kernel, alpha=alpha, max_iter=max_iter, tol=tol, check_every=check_every)
    budget = _vmem_budget()
    # TODO(synk): for N so large that a double-buffered (N,N) f32 block no longer fits
    # (~2.8k on v7x), keep Mt in HBM (memory_space=pl.ANY) and stream (tk, N) row blocks
    # with make_async_copy inside the while body.
    resident = 2 * n * n * 4 + 8 * n * 4
    out = pl.pallas_call(
        kernel,
        grid=(b,),
        out_shape=jax.ShapeDtypeStruct((b, 1, n), jnp.float32),
        in_specs=[pl.BlockSpec((1, n, n), lambda g: (g, 0, 0))],
        out_specs=pl.BlockSpec((1, 1, n), lambda g: (g, 0, 0)),
        compiler_params=pltpu.CompilerParams(
            dimension_semantics=("parallel",),
            vmem_limit_bytes=_vmem_limit(resident, budget)),
    )(mt_batch)
    return out[:, 0, :]


def encode_pallas(node_id_hvs, adjacency):
    """node_id_hvs: (B, N, D) f32 (+-1), adjacency: (B, N, N) {0,1}. Returns (B, D)."""
    b, n, d = node_id_hvs.shape
    d_pad = ((d + 127) // 128) * 128                 # lane-dense stores (no vst.msk)
    if d_pad != d:
        node_id_hvs = jnp.pad(node_id_hvs, ((0, 0), (0, 0), (0, d_pad - d)))
    budget = _vmem_budget()
    td, resident = _choose_encode_td(d_pad, n, b, budget)
    h_bf16 = node_id_hvs.astype(jnp.bfloat16)        # +-1 -> exact in bf16
    g_bf16 = adjacency.astype(jnp.bfloat16)          # 0/1 -> exact in bf16
    # TODO(synk): int8 operands (v5e/v6e) or float8_e4m3 (v7x) would halve the H stream
    # and double MXU rate at large N/D; bf16 kept here for cross-generation portability.
    out = pl.pallas_call(
        _encode_kernel,
        grid=(b, d_pad // td),
        out_shape=jax.ShapeDtypeStruct((b, 1, d_pad), jnp.float32),
        in_specs=[pl.BlockSpec((1, n, n), lambda g, j: (g, 0, 0)),
                  pl.BlockSpec((1, n, td), lambda g, j: (g, 0, j))],
        out_specs=pl.BlockSpec((1, 1, td), lambda g, j: (g, 0, j)),
        compiler_params=pltpu.CompilerParams(
            dimension_semantics=("parallel", "parallel"),
            vmem_limit_bytes=_vmem_limit(resident, budget)),
    )(g_bf16, h_bf16)
    return out[:, 0, :d]


@jax.jit
def _encoder_device(mt_batch, adjacency_batch, node_id_weight):
    """Fused device portion of Encoder.forward for a batch of graphs (1 dispatch)."""
    num_nodes = mt_batch.shape[-1]
    out_features = node_id_weight.shape[1]

    pr = pagerank_pallas(mt_batch)                               # (B, N)

    # node_id_hvs[pr_argsort] = node_ids.weight[:num_nodes]   (permutation scatter)
    # TODO(synk): jnp.argsort tie-breaking may differ from torch.argsort on exact ties.
    pr_argsort = jnp.argsort(pr, axis=-1)                        # (B, N)
    base = node_id_weight[:num_nodes].astype(jnp.float32)        # (N, D)

    def scatter_one(perm):
        return jnp.zeros((num_nodes, out_features), jnp.float32).at[perm].set(base)

    node_id_hvs = jax.vmap(scatter_one)(pr_argsort)              # (B, N, D)
    out = encode_pallas(node_id_hvs, adjacency_batch)            # (B, D)
    return out, node_id_hvs, pr


# ------------------------- graph / module glue (host) ----------------------- #

def build_graph(num_nodes, variant=0):
    """Deterministic small directed graph; every node has in-degree >= 1."""
    edges = set()
    for i in range(num_nodes):
        edges.add((i, (i + 1 + variant) % num_nodes))
        edges.add(((i + 5 + variant) % num_nodes, i))
        edges.add((i, (3 * i + 1 + variant) % num_nodes))
    return np.array(sorted(edges), dtype=np.int32).T             # (2, E)


def dense_stochastic_alpha_T(edge_index, num_nodes, alpha):
    """Returns (alpha * M)^T where M[r, c] = alpha / in_deg(c) for each edge (r, c)."""
    rows, cols = edge_index
    deg = np.bincount(cols, minlength=num_nodes).astype(np.float64)
    vals = (alpha / deg[cols]).astype(np.float32)
    mt = np.zeros((num_nodes, num_nodes), dtype=np.float32)
    mt[cols, rows] = vals                                        # transposed placement
    return mt


def to_undirected_np(edge_index):
    und = np.sort(edge_index, axis=0)        # sort each edge pair (dim=0)
    und = np.unique(und, axis=1)             # unique columns
    return und


def undirected_adjacency(edge_index_und, num_nodes):
    """G = R^T C: one 1 per unique undirected edge at (row, col)."""
    row, col = edge_index_und
    g = np.zeros((num_nodes, num_nodes), dtype=np.float32)
    g[row, col] = 1.0
    return g


def pagerank_numpy(edge_index, num_nodes, alpha=ALPHA, max_iter=MAX_ITER, tol=TOL):
    """Plain numpy mirror of the torch pagerank loop (reference)."""
    rows, cols = edge_index
    deg = np.bincount(cols, minlength=num_nodes).astype(np.float32)
    m = np.zeros((num_nodes, num_nodes), np.float32)
    m[rows, cols] = (1.0 / deg[cols]).astype(np.float32)
    m = (alpha * m).astype(np.float32)
    v = np.full((num_nodes,), 1.0 / num_nodes, np.float32)
    p = np.full((num_nodes,), 1.0 / num_nodes, np.float32)
    for _ in range(max_iter):
        v_prev = v
        v = m @ v + p * (1.0 - alpha)
        if np.abs(v - v_prev).sum() < num_nodes * tol:
            return v
    return v


def encoder_forward_batched(edge_indices, num_nodes, node_id_weight):
    """Mirrors Encoder.forward of the PyTorch module, for a batch of graphs."""
    mt = np.stack([dense_stochastic_alpha_T(ei, num_nodes, ALPHA) for ei in edge_indices])
    unds = [to_undirected_np(ei) for ei in edge_indices]
    adjacency = np.stack([undirected_adjacency(u, num_nodes) for u in unds])
    out, node_id_hvs, pr = _encoder_device(
        jnp.asarray(mt), jnp.asarray(adjacency), node_id_weight)
    return out, node_id_hvs, pr, unds


# ----------------------------------- main ----------------------------------- #

if __name__ == "__main__":
    num_graphs = 4          # batch of graphs (amortizes launch / pipeline overhead)
    num_nodes = 16          # x.num_nodes
    out_features = 128      # hypervector dimensionality
    emb_size = num_nodes    # embeddings.Random(size, out_features); forward uses weight[:num_nodes]

    # embeddings.Random -> random bipolar (+1/-1) hypervectors, deterministic init.
    key = jax.random.PRNGKey(0)
    node_id_weight = jnp.where(
        jax.random.bernoulli(key, 0.5, (emb_size, out_features)), 1.0, -1.0
    ).astype(jnp.float32)

    edge_indices = [build_graph(num_nodes, variant=g) for g in range(num_graphs)]

    out, node_id_hvs, pr, unds = encoder_forward_batched(
        edge_indices, num_nodes, node_id_weight)
    out = jax.block_until_ready(out)

    # per-graph references (sanity checks of both kernel paths)
    for b in range(num_graphs):
        pr_ref = pagerank_numpy(edge_indices[b], num_nodes)
        np.testing.assert_allclose(np.asarray(pr[b]), pr_ref, rtol=1e-3, atol=1e-4)
        row, col = unds[b]
        ref = jnp.sum(node_id_hvs[b, row] * node_id_hvs[b, col], axis=0)
        np.testing.assert_allclose(np.asarray(out[b]), np.asarray(ref),
                                   rtol=1e-5, atol=1e-5)

    assert out.shape == (num_graphs, out_features)
    print("KERNEL_OK")
</pallas_src>

<mosaic_0001>
module attributes {stable_mosaic.version = 11 : i64} {
  func.func @_pagerank_kernel(%arg0: i32, %arg1: memref<1x16x16xf32, #tpu.memory_space<vmem>>, %arg2: memref<1x1x16xf32, #tpu.memory_space<vmem>>) attributes {dimension_semantics = [#tpu.dimension_semantics<parallel>], iteration_bounds = array<i64: 4>, scalar_prefetch = 0 : i64, scratch_operands = 0 : i64, tpu.core_type = #tpu.core_type<tc>, window_params = [{transform_indices = @transform_0, window_bounds = array<i64: 1, 16, 16>}, {transform_indices = @transform_1, window_bounds = array<i64: 1, 1, 16>}]} {
    %c0 = arith.constant 0 : index
    %c0_0 = arith.constant 0 : index
    %c0_1 = arith.constant 0 : index
    %0 = vector.load %arg1[%c0, %c0_0, %c0_1] : memref<1x16x16xf32, #tpu.memory_space<vmem>>, vector<1x16x16xf32>
    %1 = vector.shape_cast %0 : vector<1x16x16xf32> to vector<16x16xf32>
    %cst = arith.constant 9.375000e-03 : f32
    %2 = vector.broadcast %cst : f32 to vector<1x16xf32>
    %cst_2 = arith.constant 6.250000e-02 : f32
    %3 = vector.broadcast %cst_2 : f32 to vector<1x16xf32>
    %cst_3 = arith.constant 1.600000e-05 : f32
    %c0_i32 = arith.constant 0 : i32
    %c0_i32_4 = arith.constant 0 : i32
    %4:3 = scf.while (%arg3 = %3, %arg4 = %c0_i32, %arg5 = %c0_i32_4) : (vector<1x16xf32>, i32, i32) -> (vector<1x16xf32>, i32, i32) {
      %c100_i32 = arith.constant 100 : i32
      %8 = arith.cmpi slt, %arg4, %c100_i32 : i32
      %c0_i32_8 = arith.constant 0 : i32
      %9 = arith.cmpi eq, %arg5, %c0_i32_8 : i32
      %10 = arith.andi %8, %9 : i1
      scf.condition(%10) %arg3, %arg4, %arg5 : vector<1x16xf32>, i32, i32
    } do {
    ^bb0(%arg3: vector<1x16xf32>, %arg4: i32, %arg5: i32):
      %cst_8 = arith.constant dense<0.000000e+00> : vector<1x16xf32>
      %8 = tpu.matmul %arg3, %1, %cst_8 {dimension_numbers = #tpu.dot_dimension_numbers<[1], [0], [0], [1], [0, 0, 1, 1], [], []>} : vector<1x16xf32>, vector<16x16xf32>, vector<1x16xf32> -> vector<1x16xf32>
      %9 = arith.addf %8, %2 : vector<1x16xf32>
      %10 = arith.subf %9, %arg3 : vector<1x16xf32>
      %11 = math.absf %10 : vector<1x16xf32>
      %12 = vector.shape_cast %11 : vector<1x16xf32> to vector<1x1x16xf32>
      %cst_9 = arith.constant dense<0.000000e+00> : vector<1xf32>
      %13 = vector.multi_reduction <add>, %12, %cst_9 [1, 2] : vector<1x1x16xf32> to vector<1xf32>
      %14 = vector.shape_cast %13 : vector<1xf32> to vector<1x1x1xf32>
      %15 = vector.extract %14[0, 0, 0] : f32 from vector<1x1x1xf32>
      %cst_10 = arith.constant dense<0.000000e+00> : vector<1x16xf32>
      %16 = tpu.matmul %9, %1, %cst_10 {dimension_numbers = #tpu.dot_dimension_numbers<[1], [0], [0], [1], [0, 0, 1, 1], [], []>} : vector<1x16xf32>, vector<16x16xf32>, vector<1x16xf32> -> vector<1x16xf32>
      %17 = arith.addf %16, %2 : vector<1x16xf32>
      %18 = arith.subf %17, %9 : vector<1x16xf32>
      %19 = math.absf %18 : vector<1x16xf32>
      %20 = vector.shape_cast %19 : vector<1x16xf32> to vector<1x1x16xf32>
      %cst_11 = arith.constant dense<0.000000e+00> : vector<1xf32>
      %21 = vector.multi_reduction <add>, %20, %cst_11 [1, 2] : vector<1x1x16xf32> to vector<1xf32>
      %22 = vector.shape_cast %21 : vector<1xf32> to vector<1x1x1xf32>
      %23 = vector.extract %22[0, 0, 0] : f32 from vector<1x1x1xf32>
      %cst_12 = arith.constant dense<0.000000e+00> : vector<1x16xf32>
      %24 = tpu.matmul %17, %1, %cst_12 {dimension_numbers = #tpu.dot_dimension_numbers<[1], [0], [0], [1], [0, 0, 1, 1], [], []>} : vector<1x16xf32>, vector<16x16xf32>, vector<1x16xf32> -> vector<1x16xf32>
      %25 = arith.addf %24, %2 : vector<1x16xf32>
      %26 = arith.subf %25, %17 : vector<1x16xf32>
      %27 = math.absf %26 : vector<1x16xf32>
      %28 = vector.shape_cast %27 : vector<1x16xf32> to vector<1x1x16xf32>
      %cst_13 = arith.constant dense<0.000000e+00> : vector<1xf32>
      %29 = vector.multi_reduction <add>, %28, %cst_13 [1, 2] : vector<1x1x16xf32> to vector<1xf32>
      %30 = vector.shape_cast %29 : vector<1xf32> to vector<1x1x1xf32>
      %31 = vector.extract %30[0, 0, 0] : f32 from vector<1x1x1xf32>
      %cst_14 = arith.constant dense<0.000000e+00> : vector<1x16xf32>
      %32 = tpu.matmul %25, %1, %cst_14 {dimension_numbers = #tpu.dot_dimension_numbers<[1], [0], [0], [1], [0, 0, 1, 1], [], []>} : vector<1x16xf32>, vector<16x16xf32>, vector<1x16xf32> -> vector<1x16xf32>
      %33 = arith.addf %32, %2 : vector<1x16xf32>
      %34 = arith.subf %33, %25 : vector<1x16xf32>
      %35 = math.absf %34 : vector<1x16xf32>
      %36 = vector.shape_cast %35 : vector<1x16xf32> to vector<1x1x16xf32>
      %cst_15 = arith.constant dense<0.000000e+00> : vector<1xf32>
      %37 = vector.multi_reduction <add>, %36, %cst_15 [1, 2] : vector<1x1x16xf32> to vector<1xf32>
      %38 = vector.shape_cast %37 : vector<1xf32> to vector<1x1x1xf32>
      %39 = vector.extract %38[0, 0, 0] : f32 from vector<1x1x1xf32>
      %40 = arith.cmpf olt, %39, %cst_3 : f32
      %41 = arith.select %40, %33, %33 : vector<1x16xf32>
      %c1_i32 = arith.constant 1 : i32
      %c0_i32_16 = arith.constant 0 : i32
      %42 = arith.select %40, %c1_i32, %c0_i32_16 : i32
      %43 = arith.cmpf olt, %31, %cst_3 : f32
      %44 = arith.select %43, %25, %41 : vector<1x16xf32>
      %c1_i32_17 = arith.constant 1 : i32
      %45 = arith.select %43, %c1_i32_17, %42 : i32
      %46 = arith.cmpf olt, %23, %cst_3 : f32
      %47 = arith.select %46, %17, %44 : vector<1x16xf32>
      %c1_i32_18 = arith.constant 1 : i32
      %48 = arith.select %46, %c1_i32_18, %45 : i32
      %49 = arith.cmpf olt, %15, %cst_3 : f32
      %50 = arith.select %49, %9, %47 : vector<1x16xf32>
      %c1_i32_19 = arith.constant 1 : i32
      %51 = arith.select %49, %c1_i32_19, %48 : i32
      %c4_i32 = arith.constant 4 : i32
      %52 = arith.addi %arg4, %c4_i32 : i32
      scf.yield %50, %52, %51 : vector<1x16xf32>, i32, i32
    }
    %c0_5 = arith.constant 0 : index
    %c0_6 = arith.constant 0 : index
    %c0_7 = arith.constant 0 : index
    %5 = vector.load %arg2[%c0_5, %c0_6, %c0_7] : memref<1x1x16xf32, #tpu.memory_space<vmem>>, vector<1x1x16xf32>
    %6 = vector.shape_cast %5 : vector<1x1x16xf32> to vector<1x16xf32>
    %7 = vector.shape_cast %4#0 : vector<1x16xf32> to vector<1x1x16xf32>
    tpu.vector_store %arg2[%c0_5, %c0_6, %c0_7], %7 {strides = array<i32>} : memref<1x1x16xf32, #tpu.memory_space<vmem>>, vector<1x1x16xf32>,
    return
  }
  func.func @transform_0(%arg0: i32) -> (i32, i32, i32) {
    %c0_i32 = arith.constant 0 : i32
    %c0_i32_0 = arith.constant 0 : i32
    %c0_i32_1 = arith.constant 0 : i32
    return %arg0, %c0_i32, %c0_i32_0 : i32, i32, i32
  }
  func.func @transform_1(%arg0: i32) -> (i32, i32, i32) {
    %c0_i32 = arith.constant 0 : i32
    %c0_i32_0 = arith.constant 0 : i32
    %c0_i32_1 = arith.constant 0 : i32
    return %arg0, %c0_i32, %c0_i32_0 : i32, i32, i32
  }
}

module attributes {stable_mosaic.version = 11 : i64} {
  func.func @_encode_kernel(%arg0: i32, %arg1: i32, %arg2: memref<1x16x16xbf16, #tpu.memory_space<vmem>>, %arg3: memref<1x16x128xbf16, #tpu.memory_space<vmem>>, %arg4: memref<1x1x128xf32, #tpu.memory_space<vmem>>) attributes {dimension_semantics = [#tpu.dimension_semantics<parallel>, #tpu.dimension_semantics<parallel>], iteration_bounds = array<i64: 4, 1>, scalar_prefetch = 0 : i64, scratch_operands = 0 : i64, tpu.core_type = #tpu.core_type<tc>, window_params = [{transform_indices = @transform_0, window_bounds = array<i64: 1, 16, 16>}, {transform_indices = @transform_1, window_bounds = array<i64: 1, 16, 128>}, {transform_indices = @transform_2, window_bounds = array<i64: 1, 1, 128>}]} {
    %c0 = arith.constant 0 : index
    %c0_0 = arith.constant 0 : index
    %c0_1 = arith.constant 0 : index
    %0 = vector.load %arg3[%c0, %c0_0, %c0_1] : memref<1x16x128xbf16, #tpu.memory_space<vmem>>, vector<1x16x128xbf16>
    %1 = vector.shape_cast %0 : vector<1x16x128xbf16> to vector<16x128xbf16>
    %c0_2 = arith.constant 0 : index
    %c0_3 = arith.constant 0 : index
    %c0_4 = arith.constant 0 : index
    %2 = vector.load %arg2[%c0_2, %c0_3, %c0_4] : memref<1x16x16xbf16, #tpu.memory_space<vmem>>, vector<1x16x16xbf16>
    %3 = vector.shape_cast %2 : vector<1x16x16xbf16> to vector<16x16xbf16>
    %cst = arith.constant dense<0.000000e+00> : vector<16x128xf32>
    %4 = tpu.matmul %3, %1, %cst {dimension_numbers = #tpu.dot_dimension_numbers<[1], [0], [0], [1], [0, 0, 1, 1], [], []>} : vector<16x16xbf16>, vector<16x128xbf16>, vector<16x128xf32> -> vector<16x128xf32>
    %5 = arith.extf %1 : vector<16x128xbf16> to vector<16x128xf32>
    %6 = arith.mulf %5, %4 : vector<16x128xf32>
    %cst_5 = arith.constant dense<0.000000e+00> : vector<128xf32>
    %7 = vector.multi_reduction <add>, %6, %cst_5 [0] : vector<16x128xf32> to vector<128xf32>
    %8 = vector.shape_cast %7 : vector<128xf32> to vector<1x128xf32>
    %c0_6 = arith.constant 0 : index
    %c0_7 = arith.constant 0 : index
    %c0_8 = arith.constant 0 : index
    %9 = vector.load %arg4[%c0_6, %c0_7, %c0_8] : memref<1x1x128xf32, #tpu.memory_space<vmem>>, vector<1x1x128xf32>
    %10 = vector.shape_cast %9 : vector<1x1x128xf32> to vector<1x128xf32>
    %11 = vector.shape_cast %8 : vector<1x128xf32> to vector<1x1x128xf32>
    tpu.vector_store %arg4[%c0_6, %c0_7, %c0_8], %11 {strides = array<i32>} : memref<1x1x128xf32, #tpu.memory_space<vmem>>, vector<1x1x128xf32>,
    return
  }
  func.func @transform_0(%arg0: i32, %arg1: i32) -> (i32, i32, i32) {
    %c0_i32 = arith.constant 0 : i32
    %c0_i32_0 = arith.constant 0 : i32
    %c0_i32_1 = arith.constant 0 : i32
    return %arg0, %c0_i32, %c0_i32_0 : i32, i32, i32
  }
  func.func @transform_1(%arg0: i32, %arg1: i32) -> (i32, i32, i32) {
    %c0_i32 = arith.constant 0 : i32
    %c0_i32_0 = arith.constant 0 : i32
    return %arg0, %c0_i32, %arg1 : i32, i32, i32
  }
  func.func @transform_2(%arg0: i32, %arg1: i32) -> (i32, i32, i32) {
    %c0_i32 = arith.constant 0 : i32
    %c0_i32_0 = arith.constant 0 : i32
    return %arg0, %c0_i32, %arg1 : i32, i32, i32
  }
}

</mosaic_0001>

<bundles_post_ra>
// kernel: _encoder_device.3
= control target key start
LH: loop header
LB: loop body
LE: loop exit
PB: predicated region body
PF: predicated region fallthrough
CT: control target
= control target key end

     0   :  { %7 = vsyncpa [#allocation3], 0  ;;  %s638_s0 = inlined_call_operand.vmem [shape: bf16[4,16,16], index: 0, kind: input, shape index: {}]   ;;  %s639_s1 = inlined_call_operand.vmem [shape: bf16[4,16,128], index: 1, kind: input, shape index: {}]   ;;  %s640_s2 = inlined_call_operand.hbm [shape: f32[4,1,128], index: 2, kind: output, shape index: {}]  }
   0x1   :  { %9 = vsyncpa [#allocation3 + $0x1], 0  ;;  %s536_s9 = smov 0   ;;  %s538_s10 = smov 0  }
   0x2   :  { %s540_s11 = smov 0   ;;  %s542_s12 = smov 0  }
   0x3   :  { %s544_s13 = smov 0   ;;  %s546_s14 = smov 0  }
   0x4 LB: > { %s355_s15 = sadd.s32 4294967295, %s516_s14   ;;  %s356_s16 = sadd.s32 4294967294, %s516_s14   ;;  %s516_s14 = sphi %s546_s14, %s15_s14   ;;  %s512_s13 = sphi %s544_s13, %s647_s13   ;;  %s508_s12 = sphi %s542_s12, %s646_s12   ;;  %s504_s11 = sphi %s540_s11, %s645_s11   ;;  %s500_s10 = sphi %s538_s10, %s644_s10   ;;  %s496_s9 = sphi %s536_s9, %s643_s9  }
   0x5   : > { %s27_s17 = sadd.s32 1, %s512_s13  ;;  %s90_s18 = sadd.s32 1, %s504_s11 }
   0x6   : > { %p29_p0 = scmp.ge.s32.totalorder %s27_s17, 4  ;;  %p100_p1 = scmp.ne.s32.totalorder %s504_s11, %s500_s10 }
   0x7   : > { %p101_p2 = scmp.eq.s32.totalorder %s355_s15, 3  ;;  %p106_p3 = scmp.ne.s32.totalorder %s500_s10, %s496_s9 }
   0x8   : > { %s649_s17 = smov (%p29_p0, %s27_s17), 0  ;;  %p107_p5 = scmp.eq.s32.totalorder %s356_s16, 3 }
   0x9   : > { %p576_p4 = por %p101_p2, %p100_p1  ;;  %s85_s20 = ssub.s32 %s512_s13, %s649_s17 }
   0xa   : > { %p359_p6 = scmp.ge.s32.totalorder %s516_s14, 1  ;;  %p88_p7 = scmp.eq.s32.totalorder %s85_s20, 0 }
   0xb   : > { %p583_p8 = por %p107_p5, %p106_p3  ;;  %p144_p9 = scmp.lt.s32.totalorder %s516_s14, 5 }
   0xc   : > { %s589_s22 = scalar_select %p88_p7, %s504_s11, %s90_s18  }
   0xd   : > { %p145_p10 = pnand %p359_p6, %p144_p9 }
   0xe   : > { %p173_p11 = scmp.lt.s32.totalorder (!%p145_p10), %s508_s12, 3  ;;  %s171_s3 = sand.u32 (!%p145_p10), 1, %s500_s10  }
   0xf   : > { %148 = sbr.rel (%p145_p10) target bundleno = 254 (0xfe), region = 28  ;;  %s367_s4 = sshll.u32 (!%p145_p10), %s508_s12, 4 }
  0x10   : > { %s172_s5 = scalar_lea.vmem (!%p145_p10), [#allocation2], %s171_s3  ;;  %s271_s15 = scalar_lea.hbm (!%p145_p10), %s640_s2, %s367_s4 }
  0x11   : > { %s273_s6 = sshll.u32 (!%p145_p10), %s172_s5, 4  ;;  %s260_s16 = scalar_lea.sflag (!%p145_p10), [#allocation3], %s171_s3  ;;  %s274_s6 = int_to_ptr.vmem [resolvable:$true] %s273_s6 }
  0x12   : > { %s440_s18 = scalar_lea.vmem (!%p145_p10), %s274_s6, 16  ;;  %s520_s20 = smov (!%p145_p10), [#allocation2]  }
  0x13   : > { %p441_p12 = scmp.ne.s32.totalorder (!%p145_p10), %s274_s6, %s440_s18 }
  0x14   : > { %v518_v0 = vmov 0.0   ;;  %vm519_vm0 = vmmov 0   ;;  %s174_s23 = scalar_select %p173_p11, %s508_s12, 3  ;;  %vm202_vm1 = vcmask 130048  }
  0x15   : > { %374 = vmatprep.subr.bf16.mxu0 %v518_v0  ;;  %376 = vmatprep.mubr.msk.bf16.mxu0 %vm519_vm0, %v518_v0  ;;  %p442_p13 = pnand %p441_p12, %p576_p4 }
  0x16   : > { %s370_s24 = sshll.u32 %s174_s23, 3  ;;  %s444_s23 = sshll.u32 %s520_s20, 4  ;;  %s445_s23 = int_to_ptr.vmem [resolvable:$false] %s444_s23 }
  0x17   : > { %s177_s27 = scalar_lea.vmem %s638_s0, %s370_s24  ;;  %s185_s30 = scalar_lea.vmem %s639_s1, %s370_s24 }
  0x18   : > { %v187_v1 = vld [vmem:[%s185_s30] sm:$0xff]   ;;  %p443_p0 = pneg %p442_p13  ;;  %s446_s12 = scalar_lea.vmem %s445_s23, 32 }
  0x19   : > { %v438_v2 = vld [vmem:[%s177_s27] sm:$0xff]   ;;  %375 = vmatpush3.bf16.msra.mxu0 %v187_v1  ;;  %v247_v4 = vunpack.c.l.bf16 %v187_v1  ;;  %v248_v5 = vunpack.c.h.bf16 %v187_v1  ;;  %p447_p1 = scmp.lt.s32.totalorder %s274_s6, %s445_s23  ;;  %p448_p2 = scmp.lt.s32.totalorder %s446_s12, %s440_s18 }
  0x1b   : > { %p449_p3 = por %p448_p2, %p447_p1 }
  0x1c   : > { %377 = vmatmul.mubr.msk.bf16.vlgmr.msra.gmra.mxu0 %vm202_vm1, %v438_v2 }
  0x1d   : > { %p450_p5 = pnand %p449_p3, %p443_p0 }
  0xdc   : > { %v240_v3 = vpop.f32.mrf.mxu0 }
  0xdd   : > { %v249_v8 = vmul.f32 %v247_v4, %v240_v3 }
  0xde   : > { %v378_v6 = vpop.f32.mrf.mxu0 }
  0xe0   : > { %v243_v7 = vpop.f32.mrf.mxu0 }
  0xe1   : > { %v250_v9 = vmul.f32 %v248_v5, %v243_v7 }
  0xe2   : > { %v379_v10 = vpop.f32.mrf.mxu0 }
  0xe3   : > { %v251_v11 = vadd.f32 %v250_v9, %v249_v8 }
  0xe5   : > { %v252_v12 = vrot.slane %v251_v11, 4 }
  0xe7   : > { %v253_v13 = vadd.f32 %v252_v12, %v251_v11 }
  0xe9   : > { %v254_v14 = vrot.slane %v253_v13, 2 }
  0xeb   : > { %v255_v15 = vadd.f32 %v254_v14, %v253_v13 }
  0xed   : > { %v256_v16 = vrot.slane %v255_v15, 1 }
  0xef   : > { %v257_v17 = vadd.f32 %v256_v16, %v255_v15 }
  0xf1   : > { %258 = vst [vmem:[%s172_s5] sm:$0x1] %v257_v17 }
  0xf2   : > { %453 = shalt.err (!%p450_p5)
}
  0xf3   : > { %s454_s24 = scalar_lea.hbm %s271_s15, 16  ;;  %s458_s27 = scalar_lea.hbm %s640_s2, 64 }
  0xf4   : > { %p455_p6 = scmp.ne.s32.totalorder %s271_s15, %s454_s24  ;;  %p459_p10 = scmp.lt.s32.totalorder %s271_s15, %s640_s2 }
  0xf5   : > { %p460_p11 = scmp.lt.s32.totalorder %s458_s27, %s454_s24 }
  0xf6   : > { %p456_p7 = pnand %p455_p6, %p576_p4 }
  0xf7   : > { %p461_p12 = por %p460_p11, %p459_p10 }
  0xf8   : > { %p457_p9 = pneg %p456_p7 }
  0xfa   : > { %p462_p13 = pnand %p461_p12, %p457_p9 }
  0xfc   : > { %465 = shalt.err (!%p462_p13)
}
  0xfd   : > { %380 = dma.vmem_to_hbm [thread:$0]  (%p576_p4), %s274_s6, 16, %s271_s15, %s260_s16  }
  0xfe PF: > { %p386_p0 = scmp.ge.s32.totalorder %s516_s14, 2  ;;  %s285_s30 = sand.u32 1, %s496_s9  }
  0xff   : > { %s286_s3 = scalar_lea.sflag [#allocation3], %s285_s30 }
 0x100   : > { %p383_p1 = pnand %p386_p0, %p583_p8 }
 0x102   : > { %p384_p2 = pneg %p383_p1 }
 0x104   : > { %491 = dma.done.wait (%p384_p2), %s286_s3, 16  }
 0x105   : > { %493 = vsyncadd (%p384_p2), %s286_s3, 4294967280  ;;  %s15_s14 = sadd.s32 1, %s516_s14   ;;  %s643_s9 = smov %s500_s10 }
 0x106   : > { %p12_p3 = scmp.ge.s32.totalorder %s15_s14, 6   ;;  %s644_s10 = smov %s504_s11 }
 0x107   : > { %s645_s11 = smov %s589_s22  ;;  %s646_s12 = smov %s512_s13 }
 0x108   : > { %s647_s13 = smov %s649_s17  ;;  %14 = sbr.rel (!%p12_p3) target bundleno = 4 (0x4), region = 66 }
 0x10d   :  { %290 = vsyncpa [#allocation3], 1 }
 0x10e   :  { %292 = vsyncpa [#allocation3 + $0x1], 1 }

// kernel: _encoder_device.2
= control target key start
LH: loop header
LB: loop body
LE: loop exit
PB: predicated region body
PF: predicated region fallthrough
CT: control target
= control target key end

     0   :  { %6 = vsyncpa [#allocation3], 0  ;;  %s966_s0 = inlined_call_operand.hbm [shape: f32[4,16,16], index: 0, kind: input, shape index: {}]   ;;  %s967_s1 = inlined_call_operand.vmem [shape: f32[4,1,16], index: 1, kind: output, shape index: {}]  }
   0x1   :  { %8 = vsyncpa [#allocation3 + $0x1], 0  ;;  %s797_s6 = smov 0   ;;  %s799_s7 = smov 0  }
   0x2   :  { %s801_s8 = smov 0   ;;  %s803_s9 = smov 0  }
   0x3 LB: > { %s816_s10 = sadd.s32 4294967295, %s772_s9   ;;  %s819_s11 = sadd.s32 1, %s772_s9   ;;  %s772_s9 = sphi %s803_s9, %s977_s9   ;;  %s768_s8 = sphi %s801_s8, %s976_s8   ;;  %s764_s7 = sphi %s799_s7, %s975_s7   ;;  %s760_s6 = sphi %s797_s6, %s974_s6  }
   0x4   : > { %s18_s12 = ssub.s32 %s772_s9, %s819_s11  ;;  %s21_s13 = sadd.s32 1, %s768_s8 }
   0x5   : > { %p19_p0 = scmp.eq.s32.totalorder %s18_s12, 0  ;;  %p28_p1 = scmp.ne.s32.totalorder %s768_s8, %s764_s7 }
   0x6   : > { %p29_p2 = scmp.eq.s32.totalorder %s772_s9, 0  ;;  %p34_p3 = scmp.ne.s32.totalorder %s764_s7, %s760_s6 }
   0x7   : > { %s829_s14 = scalar_select %p19_p0, %s768_s8, %s21_s13  }
   0x8   : > { %p30_p4 = por %p29_p2, %p28_p1  ;;  %p35_p5 = scmp.eq.s32.totalorder %s816_s10, 0 }
   0x9   : > { %p649_p6 = scmp.lt.s32.totalorder %s772_s9, 4  ;;  %s84_s16 = sand.u32 1, %s768_s8  }
   0xa   : > { %p833_p7 = por %p35_p5, %p34_p3  ;;  %s583_s17 = sshll.u32 %s84_s16, 4 }
   0xb   : > { %s594_s18 = sshll.u32 %s772_s9, 8  ;;  %s88_s22 = scalar_lea.vmem [#allocation2], %s583_s17 }
   0xc   : > { %s969_s15 = scalar_select %p833_p7, 1, 0 }
   0xd   : > { %s842_s21 = scalar_lea.hbm %s966_s0, %s594_s18  ;;  %s95_s23 = sshll.u32 %s88_s22, 4  ;;  %s844_s23 = int_to_ptr.vmem [resolvable:$true] %s95_s23 }
   0xe   : > { %p846_p8 = pnand %p649_p6, %p30_p4  ;;  %s851_s25 = scalar_lea.sflag [#allocation3], %s84_s16 }
   0xf   : > { %s702_s26 = scalar_lea.hbm %s842_s21, 256  ;;  %s707_s29 = scalar_lea.hbm %s966_s0, 1024 }
  0x10   : > { %p703_p10 = scmp.ne.s32.totalorder %s842_s21, %s702_s26  ;;  %p704_p11 = pneg %p846_p8 }
  0x11   : > { %p708_p0 = scmp.lt.s32.totalorder %s842_s21, %s966_s0  ;;  %p709_p1 = scmp.lt.s32.totalorder %s707_s29, %s702_s26 }
  0x12   : > { %p705_p12 = pnand %p704_p11, %p703_p10 }
  0x13   : > { %p710_p2 = por %p709_p1, %p708_p0 }
  0x14   : > { %p706_p13 = pneg %p705_p12 }
  0x16   : > { %p711_p3 = pnand %p710_p2, %p706_p13 }
  0x18   : > { %714 = shalt.err (!%p711_p3)
}
  0x19   : > { %s715_s3 = scalar_lea.vmem %s844_s23, 256  ;;  %s782_s4 = smov [#allocation2]  }
  0x1a   : > { %p716_p4 = scmp.ne.s32.totalorder %s844_s23, %s715_s3  ;;  %s720_s5 = sshll.u32 %s782_s4, 4  ;;  %s721_s5 = int_to_ptr.vmem [resolvable:$false] %s720_s5 }
  0x1b   : > { %s722_s6 = scalar_lea.vmem %s721_s5, 512  ;;  %p723_p10 = scmp.lt.s32.totalorder %s844_s23, %s721_s5 }
  0x1c   : > { %p718_p5 = pnand %p716_p4, %p704_p11  ;;  %p724_p12 = scmp.lt.s32.totalorder %s722_s6, %s715_s3 }
  0x1e   : > { %p719_p6 = pneg %p718_p5  ;;  %p725_p9 = por %p724_p12, %p723_p10 }
  0x20   : > { %p726_p7 = pnand %p725_p9, %p719_p6 }
  0x22   : > { %729 = shalt.err (!%p726_p7)
}
  0x23   : > { %s783_s12 = smov 128   ;;  %s784_s13 = smov 8  }
  0x24   : > { %648 = dma.hbm_to_vmem [thread:$0]  (!%p846_p8), %s842_s21, 256, %s844_s23, %s851_s25, %s783_s12, %s783_s12, %s784_s13  }
  0x25   : > { %p103_p11 = scmp.lt.s32.totalorder %s772_s9, 5  ;;  %p971_p13 = scmp.ge.s32.totalorder %s772_s9, 1 }
  0x27   : > { %p104_p0 = pnand %p971_p13, %p103_p11 }
  0x28   : > { %s109_s16 = sand.u32 (!%p104_p0), 1, %s764_s7   ;;  %p972_p7 = scmp.ne.s32.totalorder (!%p104_p0), %s969_s15, 0 }
  0x29   : > { %107 = sbr.rel (%p104_p0) target bundleno = 1057 (0x421), region = 24  ;;  %s587_s17 = sshll.u32 (!%p104_p0), %s109_s16, 4 }
  0x2a   : > { %s110_s18 = scalar_lea.sflag (!%p104_p0), [#allocation3], %s109_s16  ;;  %s113_s19 = scalar_lea.vmem (!%p104_p0), [#allocation2], %s587_s17 }
  0x2e   : > { %755 = dma.done.wait (%p972_p7), %s110_s18, 256  }
  0x2f   : > { %757 = vsyncadd (%p972_p7), %s110_s18, 4294967040  ;;  %p130_p9 = scmp.lt.s32.totalorder %s816_s10, 3  ;;  %v888_v0 = vld [vmem:[%s113_s19] sm:$0xff]  ;;  %v890_v1 = vld [vmem:[%s113_s19 + $0x8] sm:$0xff]  ;;  %s892_s22 = smov 0   ;;  %v894_v2 = vmov 0.0625  }
  0x31   : > { %s979_s10 = smov (!%p130_p9, %s816_s10), 3 }
  0x32   : > { %s132_s21 = scalar_lea.vmem %s967_s1, %s979_s10 }
  0x33 LB: >> { %v785_v3 = vmov 0.0   ;;  %vm786_vm0 = vmmov 0   ;;  %vm145_vm1 = vcmask 130048   ;;  %vm221_vm2 = vcmask 122880   ;;  %s507_s22 = sadd.s32 4, %s776_s22   ;;  %v780_v2 = vphi %v894_v2, %v973_v2   ;;  %s776_s22 = sphi %s892_s22, %s507_s22  }
  0x34   : >> { %607 = vmatprep.subr.mxu0 %v785_v3  ;;  %611 = vmatprep.mubr.msk.f32.mxu0 %vm786_vm0, %v785_v3  ;;  %p139_p4 = scmp.lt.s32.totalorder %s507_s22, 100 }
  0x35   : >> { %608 = vmatpush3.msra.mxu0 %v890_v1  ;;  %614 = vmatprep.subr.mxu1 %v785_v3 }
  0x36   : >> { %609 = vmatprep.subr.mxu0 %v785_v3  ;;  %615 = vmatpush3.msra.mxu1 %v890_v1 }
  0x37   : >> { %610 = vmatpush3.msra.mxu0 %v888_v0  ;;  %616 = vmatprep.subr.mxu1 %v785_v3 }
  0x38   : >> { %612 = vmatmul.mubr.msk.f32.vlgmr.msra.gmra.mxu0 %vm145_vm1, %v780_v2  ;;  %617 = vmatpush3.msra.mxu1 %v888_v0 }
  0x39   : >> { %618 = vmatprep.mubr.msk.f32.mxu1 %vm786_vm0, %v785_v3  ;;  %621 = vmatprep.subr.mxu0 %v785_v3 }
  0x3a   : >> { %622 = vmatpush3.msra.mxu0 %v890_v1  ;;  %625 = vmatprep.mubr.msk.f32.mxu0 %vm786_vm0, %v785_v3 }
  0x3b   : >> { %623 = vmatprep.subr.mxu0 %v785_v3  ;;  %628 = vmatprep.subr.mxu1 %v785_v3 }
  0x3c   : >> { %624 = vmatpush3.msra.mxu0 %v888_v0 }
  0xf8   : >> { %v215_v4 = vpop.f32.mrf.mxu0 }
  0xf9   : >> { %v910_v5 = vadd.f32 0.009375, %v215_v4 }
  0xfa   : >> { %v613_v6 = vpop.f32.mrf.mxu0 }
  0xfb   : >> { %619 = vmatmul.mubr.msk.f32.vlgmr.msra.gmra.mxu1 %vm145_vm1, %v910_v5  ;;  %v219_v7 = vsub.f32 %v910_v5, %v780_v2 }
  0xfc   : >> { %629 = vmatpush3.msra.mxu1 %v890_v1  ;;  %632 = vmatprep.mubr.msk.f32.mxu1 %vm786_vm0, %v785_v3 }
  0xfd   : >> { %v220_v8 = vand.u32 2147483647, %v219_v7  ;;  %630 = vmatprep.subr.mxu1 %v785_v3 }
  0xfe   : >> { %631 = vmatpush3.msra.mxu1 %v888_v0 }
  0xff   : >> { %v222_v9 = vsel %vm221_vm2, %v220_v8, 0.0 }
 0x100   : >> { %223 = vadd.xlane.f32.xlu0 %v222_v9 }
 0x189   : >> { %v224_v10 = vpop.xlane.xlu0 %223 }
 0x18a   : >> { %v225_v11 = vrot.slane %v224_v10, 4 }
 0x18c   : >> { %v226_v12 = vadd.f32 %v225_v11, %v224_v10 }
 0x18e   : >> { %v227_v13 = vrot.slane %v226_v12, 2 }
 0x190   : >> { %v228_v14 = vadd.f32 %v227_v13, %v226_v12 }
 0x192   : >> { %v229_v15 = vrot.slane %v228_v14, 1 }
 0x194   : >> { %v230_v16 = vadd.f32 %v229_v15, %v228_v14 }
 0x196   : >> { %635 = vpush %v230_v16 }
 0x1bb   : >> { %v301_v17 = vpop.f32.mrf.mxu1 }
 0x1bc   : >> { %v302_v18 = vadd.f32 0.009375, %v301_v17 }
 0x1bd   : >> { %v620_v19 = vpop.f32.mrf.mxu1 }
 0x1be   : >> { %626 = vmatmul.mubr.msk.f32.vlgmr.msra.gmra.mxu0 %vm145_vm1, %v302_v18  ;;  %v305_v20 = vsub.f32 %v302_v18, %v910_v5 }
 0x1c0   : >> { %v306_v21 = vand.u32 2147483647, %v305_v20 }
 0x1c2   : >> { %v307_v22 = vsel %vm221_vm2, %v306_v21, 0.0 }
 0x1c3   : >> { %308 = vadd.xlane.f32.xlu0 %v307_v22 }
 0x1c7   : >> { %s924_s15 = spop %635 }
 0x1c8   : >> { %p501_p8 = scmp.lt.f32.partialorder %s924_s15, 1.6e-05 }
 0x1ca   : >> { %s502_s24 = scalar_select %p501_p8, 1, 0 }
 0x1cc   : >> { %v503_v50 = vstv %s502_s24 }
 0x1cd   : >> { %vm504_vm5 = vcmp.eq.s32.totalorder %v503_v50, 1 }
 0x24c   : >> { %v309_v23 = vpop.xlane.xlu0 %308 }
 0x24d   : >> { %v310_v24 = vrot.slane %v309_v23, 4 }
 0x24f   : >> { %v311_v25 = vadd.f32 %v310_v24, %v309_v23 }
 0x251   : >> { %v312_v26 = vrot.slane %v311_v25, 2 }
 0x253   : >> { %v313_v27 = vadd.f32 %v312_v26, %v311_v25 }
 0x255   : >> { %v314_v28 = vrot.slane %v313_v27, 1 }
 0x257   : >> { %v315_v29 = vadd.f32 %v314_v28, %v313_v27 }
 0x259   : >> { %637 = vpush %v315_v29 }
 0x27e   : >> { %v386_v30 = vpop.f32.mrf.mxu0 }
 0x27f   : >> { %v387_v31 = vadd.f32 0.009375, %v386_v30 }
 0x280   : >> { %v627_v32 = vpop.f32.mrf.mxu0 }
 0x281   : >> { %633 = vmatmul.mubr.msk.f32.vlgmr.msra.gmra.mxu1 %vm145_vm1, %v387_v31  ;;  %v390_v33 = vsub.f32 %v387_v31, %v302_v18 }
 0x283   : >> { %v391_v34 = vand.u32 2147483647, %v390_v33 }
 0x285   : >> { %v392_v35 = vsel %vm221_vm2, %v391_v34, 0.0 }
 0x286   : >> { %393 = vadd.xlane.f32.xlu1 %v392_v35 }
 0x28a   : >> { %s926_s23 = spop %637 }
 0x28b   : >> { %p495_p1 = scmp.lt.f32.partialorder %s926_s23, 1.6e-05 }
 0x28d   : >> { %s496_s25 = scalar_select %p495_p1, 1, 0 }
 0x28f   : >> { %v497_v49 = vstv %s496_s25 }
 0x290   : >> { %vm498_vm4 = vcmp.eq.s32.totalorder %v497_v49, 1 }
 0x30f   : >> { %v394_v36 = vpop.xlane.xlu1 %393 }
 0x310   : >> { %v395_v37 = vrot.slane %v394_v36, 4 }
 0x312   : >> { %v396_v38 = vadd.f32 %v395_v37, %v394_v36 }
 0x314   : >> { %v397_v39 = vrot.slane %v396_v38, 2 }
 0x316   : >> { %v398_v40 = vadd.f32 %v397_v39, %v396_v38 }
 0x318   : >> { %v399_v41 = vrot.slane %v398_v40, 1 }
 0x31a   : >> { %v400_v42 = vadd.f32 %v399_v41, %v398_v40 }
 0x31c   : >> { %639 = vpush %v400_v42 }
 0x341   : >> { %v471_v43 = vpop.f32.mrf.mxu1 }
 0x342   : >> { %v472_v44 = vadd.f32 0.009375, %v471_v43 }
 0x343   : >> { %v634_v45 = vpop.f32.mrf.mxu1 }
 0x344   : >> { %v475_v46 = vsub.f32 %v472_v44, %v387_v31 }
 0x346   : >> { %v476_v47 = vand.u32 2147483647, %v475_v46 }
 0x348   : >> { %v477_v48 = vsel %vm221_vm2, %v476_v47, 0.0 }
 0x349   : >> { %478 = vadd.xlane.f32.xlu1 %v477_v48 }
 0x34d   : >> { %s640_s26 = spop %639 }
 0x34e   : >> { %p489_p2 = scmp.lt.f32.partialorder %s640_s26, 1.6e-05 }
 0x350   : >> { %s490_s27 = scalar_select %p489_p2, 1, 0 }
 0x352   : >> { %v491_v51 = vstv %s490_s27 }
 0x353   : >> { %vm492_vm3 = vcmp.eq.s32.totalorder %v491_v51, 1 }
 0x354   : >> { %v493_v52 = vsel %vm492_vm3, %v387_v31, %v472_v44 }
 0x355   : >> { %v499_v53 = vsel %vm498_vm4, %v302_v18, %v493_v52 }
 0x356   : >> { %v505_v54 = vsel %vm504_vm5, %v910_v5, %v499_v53  }
 0x357   : >> { %v973_v2 = vmov %v505_v54 }
 0x3d2   : >> { %v479_v55 = vpop.xlane.xlu1 %478 }
 0x3d3   : >> { %v480_v56 = vrot.slane %v479_v55, 4 }
 0x3d5   : >> { %v481_v57 = vadd.f32 %v480_v56, %v479_v55 }
 0x3d7   : >> { %v482_v58 = vrot.slane %v481_v57, 2 }
 0x3d9   : >> { %v483_v59 = vadd.f32 %v482_v58, %v481_v57 }
 0x3db   : >> { %v484_v60 = vrot.slane %v483_v59, 1 }
 0x3dd   : >> { %v485_v61 = vadd.f32 %v484_v60, %v483_v59 }
 0x3df   : >> { %641 = vpush %v485_v61 }
 0x410   : >> { %s642_s28 = spop %641 }
 0x411   : >> { %p487_p3 = scmp.lt.f32.partialorder %s642_s28, 1.6e-05 }
 0x413   : >> { %s488_s29 = scalar_select %p487_p3, 1, 0 }
 0x415   : >> { %s981_s29 = smov (%p489_p2, %s488_s29), 1 }
 0x416   : >> { %s983_s29 = smov (%p495_p1, %s981_s29), 1 }
 0x417   : >> { %s985_s29 = smov (%p501_p8, %s983_s29), 1 }
 0x418   : >> { %p140_p5 = scmp.eq.s32.totalorder %s985_s29, 0 }
 0x41a   : >> { %p141_p6 = pnand %p140_p5, %p139_p4 }
 0x41b   : > { %509 = vst.msk [vmem:[%s132_s21] sm:$0x1] (%p141_p6), %vm221_vm2, %v505_v54 }
 0x41c   : > { %144 = sbr.rel (!%p141_p6) target bundleno = 51 (0x33), region = 71 }
 0x421 PF: > { %p11_p10 = scmp.ge.s32.totalorder %s819_s11, 6   ;;  %s974_s6 = smov %s764_s7 }
 0x422   : > { %s975_s7 = smov %s768_s8  ;;  %s976_s8 = smov %s829_s14 }
 0x423   : > { %s977_s9 = smov %s819_s11  ;;  %13 = sbr.rel (!%p11_p10) target bundleno = 3 (0x3), region = 82 }
 0x428   :  { %527 = vsyncpa [#allocation3], 1 }
 0x429   :  { %529 = vsyncpa [#allocation3 + $0x1], 1 }

</bundles_post_ra>
